<compile_context>
chip_gen: v7x
topology: tpu7x:2x2x1
jax: 0.10.0
libtpu: 0.0.40
codegen_flags: <defaults>
</compile_context>

<pallas_src>
import functools

import jax
import jax.numpy as jnp
from jax.experimental import pallas as pl
from jax.experimental.pallas import tpu as pltpu

_MIB = 1024 * 1024


def _round_up(x, m):
    return (x + m - 1) // m * m


def _vmem_capacity_bytes():
    """Per-generation VMEM capacity (128 MiB v5e/v6e, 64 MiB per TC on v7x)."""
    try:
        return int(pltpu.get_tpu_info().vmem_capacity_bytes)
    except Exception:
        return 128 * _MIB


def _pool_kernel(tab_ref, x_ref, o_ref, *, h, w, pad, hw_pad):
    """One tile of (n, c) planes; each row of the block is a flattened H*W plane.

    tab_ref layout (f32, grid-invariant, VMEM-resident):
      rows [0          , pad)     : W-left  masks (col >= d),       d = 1..pad
      rows [pad        , 2*pad)   : W-right masks (col <= w-1-d)
      rows [2*pad      , 3*pad)   : H-up    masks (row >= d)
      rows [3*pad      , 4*pad)   : H-down  masks (row <= h-1-d)
      row   4*pad                 : 1 / in-bounds tap count (0 on padded lanes)
    """
    x = x_ref[...].astype(jnp.float32)          # (tile_nc, hw_pad) f32 compute

    def tap(i):                                  # static slice: (1, hw_pad)
        return tab_ref[i:i + 1, :]

    # ---- separable box sum, W direction: lane shift by +-d within a pixel row.
    acc_w = x
    for d in range(1, pad + 1):
        if d < w:
            acc_w = acc_w + pltpu.roll(x, d, axis=1) * tap(d - 1)
            acc_w = acc_w + pltpu.roll(x, hw_pad - d, axis=1) * tap(pad + d - 1)

    # ---- H direction: a shift of d image rows is a lane shift of d*w in the
    #      flattened axis; the precomputed masks kill all wrap-around terms
    #      (including any that would cross into the lane-padded tail).
    acc = acc_w
    for d in range(1, pad + 1):
        if d < h:
            acc = acc + pltpu.roll(acc_w, d * w, axis=1) * tap(2 * pad + d - 1)
            acc = acc + pltpu.roll(acc_w, hw_pad - d * w, axis=1) * tap(3 * pad + d - 1)

    # count_include_pad=False: multiply by 1/in-bounds-count, subtract identity.
    # Single store per tile (v5e has only 1 vst slot).
    o_ref[...] = (acc * tap(4 * pad) - x).astype(o_ref.dtype)


def _build_tables(h, w, pad, hw_pad):
    """(4*pad+1, hw_pad) f32 table: per-tap 0/1 masks + 1/count row."""
    hw = h * w
    lane = jnp.arange(hw_pad, dtype=jnp.int32)
    valid = lane < hw
    safe = jnp.minimum(lane, hw - 1)
    row = safe // w
    col = safe % w

    rows = []
    for d in range(1, pad + 1):
        rows.append(((col >= d) & valid).astype(jnp.float32))          # W left
    for d in range(1, pad + 1):
        rows.append(((col <= w - 1 - d) & valid).astype(jnp.float32))  # W right
    for d in range(1, pad + 1):
        rows.append(((row >= d) & valid).astype(jnp.float32))          # H up
    for d in range(1, pad + 1):
        rows.append(((row <= h - 1 - d) & valid).astype(jnp.float32))  # H down

    cnt_h = jnp.minimum(row + pad, h - 1) - jnp.maximum(row - pad, 0) + 1
    cnt_w = jnp.minimum(col + pad, w - 1) - jnp.maximum(col - pad, 0) + 1
    inv_cnt = jnp.where(valid, 1.0 / (cnt_h * cnt_w).astype(jnp.float32), 0.0)
    rows.append(inv_cnt)
    return jnp.stack(rows, axis=0)


@functools.partial(jax.jit,
                   static_argnames=("pool_size", "block_nc", "vmem_limit_bytes"))
def _pooling_forward_impl(x_nchw, pool_size, block_nc, vmem_limit_bytes):
    pad = pool_size // 2
    n, c, h, w = x_nchw.shape
    nc, hw = n * c, h * w
    hw_pad = _round_up(hw, 128)

    # Zero-copy 2-D view: one row per (n, c) plane, H*W on the lane axis.
    # Lane-pad to a 128 multiple so loads / rolls / stores are unmasked.
    x2 = x_nchw.reshape(nc, hw)
    if hw_pad != hw:
        x2 = jnp.pad(x2, ((0, 0), (0, hw_pad - hw)))

    tables = _build_tables(h, w, pad, hw_pad)
    grid = (pl.cdiv(nc, block_nc),)
    itemsize = x_nchw.dtype.itemsize

    cost = pl.CostEstimate(
        flops=int((4 * pad + 2) * nc * hw),
        transcendentals=0,
        bytes_accessed=int(2 * nc * hw * itemsize),
    )

    kernel = functools.partial(_pool_kernel, h=h, w=w, pad=pad, hw_pad=hw_pad)

    out2 = pl.pallas_call(
        kernel,
        out_shape=jax.ShapeDtypeStruct((nc, hw_pad), x_nchw.dtype),
        grid=grid,
        in_specs=[
            # Tiny grid-invariant mask/inv-count table: DMA'd once, VMEM-resident.
            pl.BlockSpec((4 * pad + 1, hw_pad), lambda i: (0, 0)),
            pl.BlockSpec((block_nc, hw_pad), lambda i: (i, 0)),   # x tile
        ],
        out_specs=pl.BlockSpec((block_nc, hw_pad), lambda i: (i, 0)),
        compiler_params=pltpu.CompilerParams(
            dimension_semantics=("parallel",),
            vmem_limit_bytes=vmem_limit_bytes,
        ),
        cost_estimate=cost,
    )(tables, x2)

    if hw_pad != hw:
        out2 = out2[:, :hw]
    return out2.reshape(n, c, h, w)


def pooling_forward(x_nchw, pool_size=3, block_nc=None):
    """AvgPool2d(pool_size, stride=1, pad=pool_size//2, count_include_pad=False)(x) - x."""
    if pool_size % 2 != 1:
        raise ValueError("only odd pool_size is shape-preserving with stride=1")
    n, c, h, w = x_nchw.shape
    nc, hw = n * c, h * w
    hw_pad = _round_up(hw, 128)

    itemsize = int(x_nchw.dtype.itemsize)
    sublane = max(8, 32 // max(itemsize, 1))      # f32 -> 8, bf16 -> 16, int8 -> 32

    # Generation-aware VMEM budgeting: ~4 MiB activation blocks + 64 MiB scoped
    # limit on v5e/v6e (128 MiB physical); ~2 MiB blocks + <=48 MiB on v7x (64 MiB).
    vmem_cap = _vmem_capacity_bytes()
    big_vmem = vmem_cap >= 100 * _MIB
    vmem_limit = 64 * _MIB if big_vmem else min(48 * _MIB, (vmem_cap * 3) // 4)
    block_budget = (4 if big_vmem else 2) * _MIB

    if block_nc is None:
        # Live VMEM per block is ~6-8x the f32 row bytes (in/out double-buffered
        # + f32 temporaries), so budget against f32 rows even for bf16 I/O.
        row_bytes = hw_pad * 4
        by_budget = max(sublane, (block_budget // row_bytes) // sublane * sublane)
        # Keep >= 4 grid steps so v7x's 2 TensorCores and the DMA pipeline stay busy.
        by_steps = _round_up(pl.cdiv(nc, 4), sublane)
        block_nc = max(sublane, min(by_budget, by_steps))
    if block_nc >= nc:
        block_nc = nc                  # single full block along N*C (tiny inputs)
    elif block_nc % sublane != 0:
        raise ValueError(f"block_nc must be a multiple of {sublane} (or >= N*C)")

    return _pooling_forward_impl(x_nchw, pool_size, block_nc, vmem_limit)


def _reference_forward(x_nchw, pool_size=3):
    """Pure-JAX (XLA) reference mirroring the PyTorch module (f32 result)."""
    pad = pool_size // 2
    window = (1, 1, pool_size, pool_size)
    strides = (1, 1, 1, 1)
    padding = ((0, 0), (0, 0), (pad, pad), (pad, pad))
    x = x_nchw.astype(jnp.float32)
    sums = jax.lax.reduce_window(x, 0.0, jax.lax.add, window, strides, padding)
    cnts = jax.lax.reduce_window(jnp.ones_like(x), 0.0, jax.lax.add,
                                 window, strides, padding)
    return sums / cnts - x


if __name__ == "__main__":
    key = jax.random.PRNGKey(0)
    k1, k2, k3, k4 = jax.random.split(key, 4)

    # 1) Primary demo shape (NCHW, f32).
    x = jax.random.normal(k1, (2, 4, 16, 16), jnp.float32)
    out = jax.block_until_ready(pooling_forward(x))
    assert out.shape == x.shape
    assert jnp.allclose(out, _reference_forward(x), atol=1e-5, rtol=1e-5)

    # 2) Larger N*C with an explicit small block: multi-step pipelined grid.
    x2 = jax.random.normal(k2, (2, 64, 16, 16), jnp.float32)
    out2 = jax.block_until_ready(pooling_forward(x2, block_nc=16))
    assert jnp.allclose(out2, _reference_forward(x2), atol=1e-5, rtol=1e-5)

    # 3) N*C not a multiple of block_nc: ragged last grid step (OOB-padded block).
    x3 = jax.random.normal(k3, (3, 20, 16, 16), jnp.float32)     # nc = 60
    out3 = jax.block_until_ready(pooling_forward(x3))
    assert jnp.allclose(out3, _reference_forward(x3), atol=1e-5, rtol=1e-5)

    # 4) H*W not a multiple of 128 (EfficientFormer 14x14 stage): lane-padded path.
    x4 = jax.random.normal(k4, (2, 8, 14, 14), jnp.float32)      # hw = 196
    out4 = jax.block_until_ready(pooling_forward(x4))
    assert jnp.allclose(out4, _reference_forward(x4), atol=1e-5, rtol=1e-5)

    # 5) bf16 I/O (halves HBM traffic; in-kernel accumulate stays f32).
    x5 = x2.astype(jnp.bfloat16)
    out5 = jax.block_until_ready(pooling_forward(x5))
    assert out5.dtype == jnp.bfloat16
    ref5 = _reference_forward(x5.astype(jnp.float32))
    assert jnp.allclose(out5.astype(jnp.float32), ref5, atol=3e-2, rtol=3e-2)

    print("KERNEL_OK")
</pallas_src>

<mosaic_0001>
module attributes {stable_mosaic.version = 11 : i64} {
  func.func @_pool_kernel(%arg0: i32, %arg1: memref<5x256xf32, #tpu.memory_space<vmem>>, %arg2: memref<8x256xf32, #tpu.memory_space<vmem>>, %arg3: memref<8x256xf32, #tpu.memory_space<vmem>>) attributes {dimension_semantics = [#tpu.dimension_semantics<parallel>], iteration_bounds = array<i64: 1>, scalar_prefetch = 0 : i64, scratch_operands = 0 : i64, tpu.core_type = #tpu.core_type<tc>, window_params = [{pipeline_mode = #tpu.pipeline_mode<synchronous>, transform_indices = @transform_0, window_bounds = array<i64: 5, 256>}, {transform_indices = @transform_1, window_bounds = array<i64: 8, 256>}, {transform_indices = @transform_2, window_bounds = array<i64: 8, 256>}]} {
    %c0 = arith.constant 0 : index
    %c0_0 = arith.constant 0 : index
    %0 = vector.load %arg2[%c0, %c0_0] : memref<8x256xf32, #tpu.memory_space<vmem>>, vector<8x256xf32>
    %c1_i32 = arith.constant 1 : i32
    %1 = tpu.dynamic_rotate %0 by %c1_i32 dim 1 : vector<8x256xf32>, i32 -> vector<8x256xf32>
    %c0_1 = arith.constant 0 : index
    %c0_2 = arith.constant 0 : index
    %2 = vector.load %arg1[%c0_1, %c0_2] : memref<5x256xf32, #tpu.memory_space<vmem>>, vector<1x256xf32>
    %3 = vector.broadcast %2 : vector<1x256xf32> to vector<8x256xf32>
    %4 = arith.mulf %1, %3 : vector<8x256xf32>
    %5 = arith.addf %0, %4 : vector<8x256xf32>
    %c255_i32 = arith.constant 255 : i32
    %6 = tpu.dynamic_rotate %0 by %c255_i32 dim 1 : vector<8x256xf32>, i32 -> vector<8x256xf32>
    %c1 = arith.constant 1 : index
    %c0_3 = arith.constant 0 : index
    %7 = vector.load %arg1[%c1, %c0_3] : memref<5x256xf32, #tpu.memory_space<vmem>>, vector<1x256xf32>
    %8 = vector.broadcast %7 : vector<1x256xf32> to vector<8x256xf32>
    %9 = arith.mulf %6, %8 : vector<8x256xf32>
    %10 = arith.addf %5, %9 : vector<8x256xf32>
    %c16_i32 = arith.constant 16 : i32
    %11 = tpu.dynamic_rotate %10 by %c16_i32 dim 1 : vector<8x256xf32>, i32 -> vector<8x256xf32>
    %c2 = arith.constant 2 : index
    %c0_4 = arith.constant 0 : index
    %12 = vector.load %arg1[%c2, %c0_4] : memref<5x256xf32, #tpu.memory_space<vmem>>, vector<1x256xf32>
    %13 = vector.broadcast %12 : vector<1x256xf32> to vector<8x256xf32>
    %14 = arith.mulf %11, %13 : vector<8x256xf32>
    %15 = arith.addf %10, %14 : vector<8x256xf32>
    %c240_i32 = arith.constant 240 : i32
    %16 = tpu.dynamic_rotate %10 by %c240_i32 dim 1 : vector<8x256xf32>, i32 -> vector<8x256xf32>
    %c3 = arith.constant 3 : index
    %c0_5 = arith.constant 0 : index
    %17 = vector.load %arg1[%c3, %c0_5] : memref<5x256xf32, #tpu.memory_space<vmem>>, vector<1x256xf32>
    %18 = vector.broadcast %17 : vector<1x256xf32> to vector<8x256xf32>
    %19 = arith.mulf %16, %18 : vector<8x256xf32>
    %20 = arith.addf %15, %19 : vector<8x256xf32>
    %c4 = arith.constant 4 : index
    %c0_6 = arith.constant 0 : index
    %21 = vector.load %arg1[%c4, %c0_6] : memref<5x256xf32, #tpu.memory_space<vmem>>, vector<1x256xf32>
    %22 = vector.broadcast %21 : vector<1x256xf32> to vector<8x256xf32>
    %23 = arith.mulf %20, %22 : vector<8x256xf32>
    %24 = arith.subf %23, %0 : vector<8x256xf32>
    %c0_7 = arith.constant 0 : index
    %c0_8 = arith.constant 0 : index
    %25 = vector.load %arg3[%c0_7, %c0_8] : memref<8x256xf32, #tpu.memory_space<vmem>>, vector<8x256xf32>
    tpu.vector_store %arg3[%c0_7, %c0_8], %24 {strides = array<i32>} : memref<8x256xf32, #tpu.memory_space<vmem>>, vector<8x256xf32>,
    return
  }
  func.func @transform_0(%arg0: i32) -> (i32, i32) {
    %c0_i32 = arith.constant 0 : i32
    %c0_i32_0 = arith.constant 0 : i32
    %c0_i32_1 = arith.constant 0 : i32
    return %c0_i32, %c0_i32_0 : i32, i32
  }
  func.func @transform_1(%arg0: i32) -> (i32, i32) {
    %c0_i32 = arith.constant 0 : i32
    %c0_i32_0 = arith.constant 0 : i32
    return %arg0, %c0_i32 : i32, i32
  }
  func.func @transform_2(%arg0: i32) -> (i32, i32) {
    %c0_i32 = arith.constant 0 : i32
    %c0_i32_0 = arith.constant 0 : i32
    return %arg0, %c0_i32 : i32, i32
  }
}

</mosaic_0001>

<bundles_post_ra>
// kernel: _pooling_forward_impl.1
= control target key start
LH: loop header
LB: loop body
LE: loop exit
PB: predicated region body
PF: predicated region fallthrough
CT: control target
= control target key end

     0   :  { %7 = vsyncpa [#allocation3], 0  ;;  %s319_s0 = inlined_call_operand.hbm [shape: f32[5,256], index: 0, kind: input, shape index: {}]   ;;  %s320_s1 = inlined_call_operand.hbm [shape: f32[8,256], index: 1, kind: input, shape index: {}]   ;;  %s321_s2 = inlined_call_operand.hbm [shape: f32[8,256], index: 2, kind: output, shape index: {}]  }
   0x1   :  { %8 = vsyncpa [#allocation6], 0 }
   0x2   :  { %9 = vsyncpa [#allocation4], 0  ;;  %s249_s9 = smov [#allocation2]   ;;  %s250_s11 = smov [#allocation5]  }
   0x3   :  { %s16_s10 = sshll.u32 %s249_s9, 4  ;;  %s26_s12 = sshll.u32 %s250_s11, 4  ;;  %s17_s10 = int_to_ptr.vmem [resolvable:$true] %s16_s10  ;;  %s27_s12 = int_to_ptr.vmem [resolvable:$true] %s26_s12 }
   0x4   :  { %s177_s15 = scalar_lea.hbm %s319_s0, 256 }
   0x5   :  { %p178_p0 = scmp.ne.s32.totalorder %s319_s0, %s177_s15  ;;  %p181_p1 = scmp.lt.u32.totalorder %s177_s15, %s319_s0 }
   0x7   :  { %p183_p2 = pnand %p181_p1, %p178_p0 }
   0x9   :  { %186 = shalt.err (!%p183_p2)
}
   0xa   :  { %s187_s20 = scalar_lea.vmem %s17_s10, 256  ;;  %p192_p4 = scmp.lt.s32.totalorder %s17_s10, %s17_s10 }
   0xb   :  { %p188_p3 = scmp.ne.s32.totalorder %s17_s10, %s187_s20  ;;  %p193_p5 = scmp.lt.s32.totalorder %s187_s20, %s187_s20 }
   0xd   :  { %p194_p6 = por %p193_p5, %p192_p4 }
   0xf   :  { %p195_p7 = pnand %p194_p6, %p188_p3 }
  0x11   :  { %198 = shalt.err (!%p195_p7)
}
  0x12   :  { %19 = dma.hbm_to_vmem [thread:$0]  %s319_s0, 256, %s17_s10, [#allocation3]  }
  0x13   :  { %s199_s25 = scalar_lea.hbm %s320_s1, 256 }
  0x14   :  { %p200_p8 = scmp.ne.s32.totalorder %s320_s1, %s199_s25  ;;  %p203_p9 = scmp.lt.u32.totalorder %s199_s25, %s320_s1 }
  0x16   :  { %p205_p10 = pnand %p203_p9, %p200_p8 }
  0x18   :  { %208 = shalt.err (!%p205_p10)
}
  0x19   :  { %s209_s30 = scalar_lea.vmem %s27_s12, 256  ;;  %p214_p12 = scmp.lt.s32.totalorder %s27_s12, %s27_s12 }
  0x1a   :  { %p210_p11 = scmp.ne.s32.totalorder %s27_s12, %s209_s30  ;;  %p215_p13 = scmp.lt.s32.totalorder %s209_s30, %s209_s30 }
  0x1c   :  { %p216_p0 = por %p215_p13, %p214_p12 }
  0x1e   :  { %p217_p1 = pnand %p216_p0, %p210_p11 }
  0x20   :  { %220 = shalt.err (!%p217_p1)
}
  0x21   :  { %29 = dma.hbm_to_vmem [thread:$0]  %s320_s1, 256, %s27_s12, [#allocation6]  }
  0x22   :  { %243 = dma.done.wait [#allocation3], 256  }
  0x23   :  { %244 = vsyncadd [#allocation3], 4294967040 }
  0x24   :  { %245 = dma.done.wait [#allocation6], 256  }
  0x25   :  { %246 = vsyncadd [#allocation6], 4294967040  ;;  %v295_v0 = vld [vmem:[#allocation5] sm:$0xff]  ;;  %s251_s4 = smov 127   ;;  %s252_s5 = smov 1   ;;  %v299_v1 = vld [vmem:[#allocation5 + $0x8] sm:$0xff]  ;;  %v42_v2 = vlaneseq }
  0x26   :  { %63 = vrot.lane.b32.xlu1 %v295_v0, %s251_s4  ;;  %38 = vrot.lane.b32.xlu0 %v295_v0, %s252_s5  ;;  %v47_v7 = vld [vmem:[#allocation2] ss:$8 sm:$0x3]  ;;  %v71_v10 = vld [vmem:[#allocation2 + $0x1] ss:$8 sm:$0x3] }
  0x27   :  { %v50_v3 = vshrl.u32 %v42_v2, 7  ;;  %v43_v4 = vand.u32 127, %v42_v2  ;;  %s253_s1 = smov 16   ;;  %s254_s6 = smov 112  }
  0x28   :  { %v95_v29 = vld [vmem:[#allocation2 + $0x2] ss:$8 sm:$0x3]  ;;  %v119_v32 = vld [vmem:[#allocation2 + $0x3] ss:$8 sm:$0x3] }
  0x29   :  { %v51_v5 = vsub.s32 0, %v50_v3  ;;  %v55_v6 = vsub.s32 1, %v50_v3  ;;  %vm67_vm0 = vcmp.lt.s32.totalorder %v43_v4, 127  ;;  %vm44_vm1 = vcmp.lt.s32.totalorder %v43_v4, 1  ;;  %s255_s7 = smov [#allocation7]  }
  0x2a   :  { %65 = vrot.lane.b32.xlu1 %v299_v1, %s251_s4  ;;  %40 = vrot.lane.b32.xlu0 %v299_v1, %s252_s5  ;;  %vm91_vm2 = vcmp.lt.s32.totalorder %v43_v4, 16  ;;  %vm115_vm3 = vcmp.lt.s32.totalorder %v43_v4, 112  ;;  %v136_v41 = vld [vmem:[#allocation2 + $0x4] ss:$8 sm:$0x3]  ;;  %s160_s8 = sshll.u32 %s255_s7, 4  ;;  %s161_s8 = int_to_ptr.vmem [resolvable:$true] %s160_s8 }
  0x2b   :  { %v52_v11 = vrot.slane %v47_v7, %v51_v5  ;;  %v56_v12 = vrot.slane %v47_v7, %v55_v6  ;;  %v76_v13 = vrot.slane %v71_v10, %v51_v5  ;;  %v80_v14 = vrot.slane %v71_v10, %v55_v6  ;;  %s221_s9 = scalar_lea.vmem %s161_s8, 256  ;;  %p226_p3 = scmp.lt.s32.totalorder %s161_s8, %s161_s8 }
  0x2c   :  { %v100_v30 = vrot.slane %v95_v29, %v51_v5  ;;  %v104_v31 = vrot.slane %v95_v29, %v55_v6  ;;  %v124_v39 = vrot.slane %v119_v32, %v51_v5  ;;  %v128_v40 = vrot.slane %v119_v32, %v55_v6  ;;  %p222_p2 = scmp.ne.s32.totalorder %s161_s8, %s221_s9  ;;  %p227_p4 = scmp.lt.s32.totalorder %s221_s9, %s221_s9 }
  0x2d   :  { %v141_v44 = vrot.slane %v136_v41, %v51_v5  ;;  %v145_v45 = vrot.slane %v136_v41, %v55_v6 }
  0x2e   :  { %p228_p5 = por %p227_p4, %p226_p3 }
  0x30   :  { %p229_p6 = pnand %p228_p5, %p222_p2 }
  0x98   :  { %v64_v8 = vpop.permute.xlu1 %63  ;;  %v39_v9 = vpop.permute.xlu0 %38 }
  0x9c   :  { %v66_v15 = vpop.permute.xlu1 %65  ;;  %v41_v16 = vpop.permute.xlu0 %40 }
  0x9d   :  { %v68_v17 = vsel %vm67_vm0, %v64_v8, %v66_v15  ;;  %v69_v18 = vsel %vm67_vm0, %v66_v15, %v64_v8  ;;  %v45_v19 = vsel %vm44_vm1, %v39_v9, %v41_v16  ;;  %v46_v20 = vsel %vm44_vm1, %v41_v16, %v39_v9 }
  0x9e   :  { %v59_v21 = vmul.f32 %v52_v11, %v46_v20  ;;  %v60_v22 = vmul.f32 %v56_v12, %v45_v19  ;;  %v83_v23 = vmul.f32 %v76_v13, %v68_v17  ;;  %v84_v24 = vmul.f32 %v80_v14, %v69_v18 }
  0xa0   :  { %v61_v25 = vadd.f32 %v59_v21, %v295_v0  ;;  %v62_v26 = vadd.f32 %v60_v22, %v299_v1 }
  0xa2   :  { %v85_v27 = vadd.f32 %v83_v23, %v61_v25  ;;  %v86_v28 = vadd.f32 %v84_v24, %v62_v26 }
  0xa4   :  { %87 = vrot.lane.b32.xlu0 %v85_v27, %s253_s1  ;;  %89 = vrot.lane.b32.xlu1 %v86_v28, %s253_s1 }
  0xa8   :  { %111 = vrot.lane.b32.xlu0 %v85_v27, %s254_s6  ;;  %113 = vrot.lane.b32.xlu1 %v86_v28, %s254_s6 }
 0x116   :  { %v88_v33 = vpop.permute.xlu0 %87  ;;  %v90_v34 = vpop.permute.xlu1 %89 }
 0x117   :  { %v92_v35 = vsel %vm91_vm2, %v88_v33, %v90_v34  ;;  %v93_v36 = vsel %vm91_vm2, %v90_v34, %v88_v33 }
 0x118   :  { %v107_v37 = vmul.f32 %v100_v30, %v93_v36  ;;  %v108_v38 = vmul.f32 %v104_v31, %v92_v35 }
 0x11a   :  { %v112_v42 = vpop.permute.xlu0 %111  ;;  %v114_v43 = vpop.permute.xlu1 %113  ;;  %v109_v48 = vadd.f32 %v107_v37, %v85_v27  ;;  %v110_v49 = vadd.f32 %v108_v38, %v86_v28 }
 0x11b   :  { %v116_v46 = vsel %vm115_vm3, %v112_v42, %v114_v43  ;;  %v117_v47 = vsel %vm115_vm3, %v114_v43, %v112_v42 }
 0x11c   :  { %v131_v50 = vmul.f32 %v124_v39, %v116_v46  ;;  %v132_v51 = vmul.f32 %v128_v40, %v117_v47 }
 0x11e   :  { %v133_v52 = vadd.f32 %v131_v50, %v109_v48  ;;  %v134_v53 = vadd.f32 %v132_v51, %v110_v49 }
 0x120   :  { %v148_v54 = vmul.f32 %v141_v44, %v133_v52  ;;  %v149_v55 = vmul.f32 %v145_v45, %v134_v53 }
 0x122   :  { %v150_v56 = vsub.f32 %v148_v54, %v295_v0  ;;  %v151_v57 = vsub.f32 %v149_v55, %v299_v1 }
 0x124   :  { %152 = vst [vmem:[#allocation7] sm:$0xff] %v150_v56  ;;  %153 = vst [vmem:[#allocation7 + $0x8] sm:$0xff] %v151_v57 }
 0x125   :  { %232 = shalt.err (!%p229_p6)
}
 0x126   :  { %s233_s12 = scalar_lea.hbm %s321_s2, 256 }
 0x127   :  { %p234_p7 = scmp.ne.s32.totalorder %s321_s2, %s233_s12  ;;  %p237_p8 = scmp.lt.u32.totalorder %s233_s12, %s321_s2 }
 0x129   :  { %p239_p9 = pnand %p237_p8, %p234_p7 }
 0x12b   :  { %242 = shalt.err (!%p239_p9)
}
 0x12c   :  { %163 = dma.vmem_to_hbm [thread:$0]  %s161_s8, 256, %s321_s2, [#allocation4]  }
 0x12d   :  { %247 = dma.done.wait [#allocation4], 256  }
 0x12e   :  { %248 = vsyncadd [#allocation4], 4294967040 }
 0x12f   :  { %167 = vsyncpa [#allocation3], 1 }
 0x130   :  { %168 = vsyncpa [#allocation6], 1 }
 0x131   :  { %169 = vsyncpa [#allocation4], 1 }

</bundles_post_ra>
